<compile_context>
chip_gen: v5e
topology: v5e:2x2
jax: 0.10.0
libtpu: 0.0.40
codegen_flags: <defaults>
</compile_context>

<pallas_src>
import jax
import jax.numpy as jnp
from jax.experimental import pallas as pl
from jax.experimental.pallas import tpu as pltpu

IN_SIZE = 56
HID_SIZE = 2 * IN_SIZE + 1      # 113
OUT_SIZE = 3
PAD = 128                       # lane-aligned padded feature width
SLAB_ROWS = PAD + 8             # 128 weight rows + 1 bias row, sublane-aligned

_HIGHEST = jax.lax.Precision.HIGHEST


def simple_net_kernel(x_ref, p_ref, o_ref):
    """x_ref: (B, 56); p_ref: (136, 3*128) slab; o_ref: (B, 3)."""
    x = x_ref[...]                                               # (B, 56) f32

    # Layer 1: Linear(56 -> 113) + sigmoid.  Weight sliced to its real 56 rows
    # (sublane-aligned), output padded to 128 lanes.
    w1 = p_ref[0:IN_SIZE, 0:PAD]                                 # (56, 128)
    b1 = p_ref[PAD:PAD + 1, 0:PAD]                               # (1, 128)
    h1 = jnp.dot(x, w1, preferred_element_type=jnp.float32,
                 precision=_HIGHEST)
    h1 = jax.nn.sigmoid(h1 + b1)                                 # (B, 128)

    # Layer 2: Linear(113 -> 113) + sigmoid.  Padded columns of h1 are 0.5 but
    # the corresponding zero-padded weight rows kill their contribution.
    w2 = p_ref[0:PAD, PAD:2 * PAD]                               # (128, 128)
    b2 = p_ref[PAD:PAD + 1, PAD:2 * PAD]                         # (1, 128)
    h2 = jnp.dot(h1, w2, preferred_element_type=jnp.float32,
                 precision=_HIGHEST)
    h2 = jax.nn.sigmoid(h2 + b2)                                 # (B, 128)

    # Layer 3: Linear(113 -> 3) + softmax over dim=0 (batch axis).
    # softmax(dim=0) is per-column, so slicing to the 3 real columns before
    # the softmax is exact; the padded logit columns are never touched.
    w3 = p_ref[0:PAD, 2 * PAD:3 * PAD]                           # (128, 128)
    b3 = p_ref[PAD:PAD + 1, 2 * PAD:3 * PAD]                     # (1, 128)
    logits = jnp.dot(h2, w3, preferred_element_type=jnp.float32,
                     precision=_HIGHEST) + b3                    # (B, 128)
    logits = logits[:, :OUT_SIZE]                                # (B, 3)
    m = jnp.max(logits, axis=0, keepdims=True)                   # (1, 3)
    e = jnp.exp(logits - m)
    o_ref[...] = e / jnp.sum(e, axis=0, keepdims=True)           # softmax(dim=0)


@jax.jit
def simple_net(x, param_slab):
    B = x.shape[0]
    cost = pl.CostEstimate(
        flops=2 * B * (IN_SIZE * HID_SIZE + HID_SIZE * HID_SIZE
                       + HID_SIZE * OUT_SIZE),
        transcendentals=B * (2 * HID_SIZE + OUT_SIZE),
        bytes_accessed=4 * (B * IN_SIZE + SLAB_ROWS * 3 * PAD + B * OUT_SIZE),
    )
    vmem = pl.BlockSpec(memory_space=pltpu.MemorySpace.VMEM)
    return pl.pallas_call(
        simple_net_kernel,
        out_shape=jax.ShapeDtypeStruct((B, OUT_SIZE), jnp.float32),
        in_specs=[vmem, vmem],
        out_specs=vmem,
        cost_estimate=cost,
    )(x, param_slab)


def init_params(key):
    """Deterministic PyTorch-Linear-style init; weights stored as (in, out)."""
    ks = jax.random.split(key, 6)

    def linear(kw, kb, fan_in, fan_out):
        bound = 1.0 / jnp.sqrt(fan_in)
        w = jax.random.uniform(kw, (fan_in, fan_out), jnp.float32, -bound, bound)
        b = jax.random.uniform(kb, (fan_out,), jnp.float32, -bound, bound)
        return w, b

    return (linear(ks[0], ks[1], IN_SIZE, HID_SIZE),
            linear(ks[2], ks[3], HID_SIZE, HID_SIZE),
            linear(ks[4], ks[5], HID_SIZE, OUT_SIZE))


def pack_params(params):
    """One (136, 3*128) slab: per layer k, rows 0..in-1 / cols k*128..k*128+out-1
    hold the weight, row 128 holds the bias; everything else is zero."""
    slab = jnp.zeros((SLAB_ROWS, 3 * PAD), jnp.float32)
    for k, (w, b) in enumerate(params):
        slab = slab.at[:w.shape[0], k * PAD:k * PAD + w.shape[1]].set(w)
        slab = slab.at[PAD, k * PAD:k * PAD + b.shape[0]].set(b)
    return slab


def reference(x, params):
    (w1, b1), (w2, b2), (w3, b3) = params
    h1 = jax.nn.sigmoid(jnp.dot(x, w1, precision=_HIGHEST) + b1)
    h2 = jax.nn.sigmoid(jnp.dot(h1, w2, precision=_HIGHEST) + b2)
    return jax.nn.softmax(jnp.dot(h2, w3, precision=_HIGHEST) + b3, axis=0)


if __name__ == "__main__":
    key = jax.random.PRNGKey(0)
    k_x, k_p = jax.random.split(key)

    B = 8
    x = jax.random.normal(k_x, (B, IN_SIZE), dtype=jnp.float32)
    params = init_params(k_p)
    param_slab = pack_params(params)

    out = jax.block_until_ready(simple_net(x, param_slab))

    ref = reference(x, params)
    assert out.shape == (B, OUT_SIZE)
    assert jnp.allclose(out, ref, atol=1e-5, rtol=1e-5)

    print("KERNEL_OK")
</pallas_src>

<mosaic_0001>
module attributes {stable_mosaic.version = 11 : i64} {
  func.func @simple_net_kernel(%arg0: memref<8x56xf32, #tpu.memory_space<vmem>>, %arg1: memref<136x384xf32, #tpu.memory_space<vmem>>, %arg2: memref<8x3xf32, #tpu.memory_space<vmem>>) attributes {dimension_semantics = [], scalar_prefetch = 0 : i64, scratch_operands = 0 : i64, tpu.core_type = #tpu.core_type<tc>} {
    %c0 = arith.constant 0 : index
    %c0_0 = arith.constant 0 : index
    %0 = vector.load %arg0[%c0, %c0_0] : memref<8x56xf32, #tpu.memory_space<vmem>>, vector<8x56xf32>
    %c0_1 = arith.constant 0 : index
    %c0_2 = arith.constant 0 : index
    %1 = vector.load %arg1[%c0_1, %c0_2] : memref<136x384xf32, #tpu.memory_space<vmem>>, vector<56x128xf32>
    %c128 = arith.constant 128 : index
    %c0_3 = arith.constant 0 : index
    %2 = vector.load %arg1[%c128, %c0_3] : memref<136x384xf32, #tpu.memory_space<vmem>>, vector<1x128xf32>
    %cst = arith.constant dense<0.000000e+00> : vector<8x128xf32>
    %3 = tpu.matmul %0, %1, %cst {dimension_numbers = #tpu.dot_dimension_numbers<[1], [0], [0], [1], [0, 0, 1, 1], [], []>, precision = #tpu.contract_precision<fp32>} : vector<8x56xf32>, vector<56x128xf32>, vector<8x128xf32> -> vector<8x128xf32>
    %4 = vector.broadcast %2 : vector<1x128xf32> to vector<8x128xf32>
    %5 = arith.addf %3, %4 : vector<8x128xf32>
    %6 = arith.negf %5 : vector<8x128xf32>
    %7 = math.exp %6 : vector<8x128xf32>
    %cst_4 = arith.constant 1.000000e+00 : f32
    %8 = vector.broadcast %cst_4 : f32 to vector<8x128xf32>
    %9 = arith.addf %8, %7 : vector<8x128xf32>
    %10 = arith.divf %8, %9 : vector<8x128xf32>
    %c0_5 = arith.constant 0 : index
    %c128_6 = arith.constant 128 : index
    %11 = vector.load %arg1[%c0_5, %c128_6] : memref<136x384xf32, #tpu.memory_space<vmem>>, vector<128x128xf32>
    %c128_7 = arith.constant 128 : index
    %c128_8 = arith.constant 128 : index
    %12 = vector.load %arg1[%c128_7, %c128_8] : memref<136x384xf32, #tpu.memory_space<vmem>>, vector<1x128xf32>
    %cst_9 = arith.constant dense<0.000000e+00> : vector<8x128xf32>
    %13 = tpu.matmul %10, %11, %cst_9 {dimension_numbers = #tpu.dot_dimension_numbers<[1], [0], [0], [1], [0, 0, 1, 1], [], []>, precision = #tpu.contract_precision<fp32>} : vector<8x128xf32>, vector<128x128xf32>, vector<8x128xf32> -> vector<8x128xf32>
    %14 = vector.broadcast %12 : vector<1x128xf32> to vector<8x128xf32>
    %15 = arith.addf %13, %14 : vector<8x128xf32>
    %16 = arith.negf %15 : vector<8x128xf32>
    %17 = math.exp %16 : vector<8x128xf32>
    %cst_10 = arith.constant 1.000000e+00 : f32
    %18 = vector.broadcast %cst_10 : f32 to vector<8x128xf32>
    %19 = arith.addf %18, %17 : vector<8x128xf32>
    %20 = arith.divf %18, %19 : vector<8x128xf32>
    %c0_11 = arith.constant 0 : index
    %c256 = arith.constant 256 : index
    %21 = vector.load %arg1[%c0_11, %c256] : memref<136x384xf32, #tpu.memory_space<vmem>>, vector<128x128xf32>
    %c128_12 = arith.constant 128 : index
    %c256_13 = arith.constant 256 : index
    %22 = vector.load %arg1[%c128_12, %c256_13] : memref<136x384xf32, #tpu.memory_space<vmem>>, vector<1x128xf32>
    %cst_14 = arith.constant dense<0.000000e+00> : vector<8x128xf32>
    %23 = tpu.matmul %20, %21, %cst_14 {dimension_numbers = #tpu.dot_dimension_numbers<[1], [0], [0], [1], [0, 0, 1, 1], [], []>, precision = #tpu.contract_precision<fp32>} : vector<8x128xf32>, vector<128x128xf32>, vector<8x128xf32> -> vector<8x128xf32>
    %24 = vector.broadcast %22 : vector<1x128xf32> to vector<8x128xf32>
    %25 = arith.addf %23, %24 : vector<8x128xf32>
    %26 = vector.extract_strided_slice %25 {offsets = [0, 0], sizes = [8, 3], strides = [1, 1]} : vector<8x128xf32> to vector<8x3xf32>
    %cst_15 = arith.constant dense<0xFF800000> : vector<3xf32>
    %27 = vector.multi_reduction <maximumf>, %26, %cst_15 [0] : vector<8x3xf32> to vector<3xf32>
    %28 = vector.shape_cast %27 : vector<3xf32> to vector<1x3xf32>
    %29 = vector.broadcast %28 : vector<1x3xf32> to vector<8x3xf32>
    %30 = arith.subf %26, %29 : vector<8x3xf32>
    %31 = math.exp %30 : vector<8x3xf32>
    %cst_16 = arith.constant dense<0.000000e+00> : vector<3xf32>
    %32 = vector.multi_reduction <add>, %31, %cst_16 [0] : vector<8x3xf32> to vector<3xf32>
    %33 = vector.shape_cast %32 : vector<3xf32> to vector<1x3xf32>
    %34 = vector.broadcast %33 : vector<1x3xf32> to vector<8x3xf32>
    %35 = arith.divf %31, %34 : vector<8x3xf32>
    %c0_17 = arith.constant 0 : index
    %c0_18 = arith.constant 0 : index
    %36 = vector.load %arg2[%c0_17, %c0_18] : memref<8x3xf32, #tpu.memory_space<vmem>>, vector<8x3xf32>
    tpu.vector_store %arg2[%c0_17, %c0_18], %35 {strides = array<i32>} : memref<8x3xf32, #tpu.memory_space<vmem>>, vector<8x3xf32>,
    return
  }
}

</mosaic_0001>

<bundles_post_ra>
// kernel: simple_net.1
= control target key start
LH: loop header
LB: loop body
LE: loop exit
PB: predicated region body
PF: predicated region fallthrough
CT: control target
= control target key end

     0   :  { %7 = vsyncpa [#allocation3], 0  ;;  %s1726_s0 = inlined_call_operand.hbm [shape: f32[8,56], index: 0, kind: input, shape index: {}]   ;;  %s1727_s1 = inlined_call_operand.hbm [shape: f32[136,384], index: 1, kind: input, shape index: {}]   ;;  %s1728_s2 = inlined_call_operand.vmem [shape: f32[8,3], index: 2, kind: output, shape index: {}]  }
   0x1   :  { %s14_s11 = sshll.u32 %s1726_s0, 4  ;;  %s15_s11 = int_to_ptr.hbm [resolvable:$true] %s14_s11 }
   0x2   :  { %8 = vsyncpa [#allocation5], 0  ;;  %s1142_s12 = smov [#allocation2]   ;;  %s24_s16 = sshll.u32 %s1727_s1, 4  ;;  %s25_s16 = int_to_ptr.hbm [resolvable:$true] %s24_s16 }
   0x3   :  { %s16_s13 = sshll.u32 %s1142_s12, 4  ;;  %s1143_s17 = smov [#allocation4]   ;;  %s17_s13 = int_to_ptr.vmem [resolvable:$true] %s16_s13 }
   0x4   :  { %19 = dma.hbm_to_vmem [thread:$0]  %s15_s11, 128, %s17_s13, [#allocation3]  }
   0x5   :  { %s26_s18 = sshll.u32 %s1143_s17, 4  ;;  %s1144_s19 = smov 384   ;;  %s27_s18 = int_to_ptr.vmem [resolvable:$true] %s26_s18 }
   0x6   :  { %s1145_s20 = smov 24  }
   0x7   :  { %32 = dma.hbm_to_vmem [thread:$0]  %s25_s16, 6528, %s27_s18, [#allocation5], %s1144_s19, %s1144_s19, %s1145_s20  }
   0x8   :  { %1138 = dma.done.wait [#allocation3], 128  }
   0x9   :  { %1139 = vsyncadd [#allocation3], 4294967168 }
   0xa   :  { %1140 = dma.done.wait [#allocation5], 6528  }
   0xb   :  { %1141 = vsyncadd [#allocation5], 4294960768  ;;  %v48_v0 = vld [vmem:[#allocation4 + $0x90] sm:$0xff]  ;;  %v47_v1 = vld [vmem:[#allocation4 + $0x78] sm:$0xff]  ;;  %vm50_vm0 = vcmask 457728   ;;  %vm1032_vm9 = vcmask 23552  }
   0xc   :  { %v46_v2 = vld [vmem:[#allocation4 + $0x60] sm:$0xff]  ;;  %v1167_v3 = vand.u32 4294901760, %v48_v0  ;;  %v1169_v4 = vand.u32 4294901760, %v47_v1  ;;  %v45_v6 = vld [vmem:[#allocation4 + $0x48] sm:$0xff]  ;;  %v44_v7 = vld [vmem:[#allocation4 + $0x30] sm:$0xff] }
   0xd   :  { %v1171_v5 = vand.u32 4294901760, %v46_v2  ;;  %v43_v8 = vld [vmem:[#allocation4 + $0x18] sm:$0xff]  ;;  %v1173_v9 = vand.u32 4294901760, %v45_v6  ;;  %v1175_v10 = vand.u32 4294901760, %v44_v7  ;;  %v42_v12 = vld [vmem:[#allocation4] sm:$0xff]  ;;  %v312_v35 = vld [vmem:[#allocation4 + $0x170] sm:$0xff] }
   0xe   :  { %v1177_v11 = vand.u32 4294901760, %v43_v8  ;;  %v41_v13 = vld [vmem:[#allocation2] sm:$0xff]  ;;  %64 = vmatpush.msra.mxu0 %v1167_v3  ;;  %v1181_v14 = vsub.f32 %v48_v0, %v1167_v3  ;;  %v1184_v15 = vsub.f32 %v47_v1, %v1169_v4  ;;  %188 = vmatpush.msra.mxu3 %v1167_v3  ;;  %v1190_v17 = vand.u32 4294901760, %v42_v12  ;;  %v310_v37 = vld [vmem:[#allocation4 + $0x140] sm:$0xff]  ;;  %v309_v40 = vld [vmem:[#allocation4 + $0x128] sm:$0xff] }
   0xf   :  { %v1188_v16 = vsub.f32 %v46_v2, %v1171_v5  ;;  %v1193_v18 = vsub.f32 %v45_v6, %v1173_v9  ;;  %v1196_v19 = vsub.f32 %v44_v7, %v1175_v10  ;;  %v52_v21 = vsel %vm50_vm0, %v41_v13, 0  ;;  %v311_v36 = vld [vmem:[#allocation4 + $0x158] sm:$0xff]  ;;  %v308_v41 = vld [vmem:[#allocation4 + $0x110] sm:$0xff] }
  0x10   :  { %v1199_v20 = vsub.f32 %v43_v8, %v1177_v11  ;;  %66 = vmatpush.msra.mxu0 %v1169_v4  ;;  %v97_v22 = vand.u32 4294901760, %v1181_v14  ;;  %153 = vmatpush.msra.mxu2 %v1181_v14  ;;  %v103_v23 = vand.u32 4294901760, %v1184_v15  ;;  %v1208_v25 = vsub.f32 %v42_v12, %v1190_v17  ;;  %v307_v46 = vld [vmem:[#allocation4 + $0xf8] sm:$0xff] }
  0x11   :  { %v109_v24 = vand.u32 4294901760, %v1188_v16  ;;  %190 = vmatpush.msra.mxu3 %v1169_v4  ;;  %v115_v26 = vand.u32 4294901760, %v1193_v18  ;;  %v121_v27 = vand.u32 4294901760, %v1196_v19  ;;  %v1214_v29 = vand.u32 4294901760, %v52_v21 }
  0x12   :  { %v127_v28 = vand.u32 4294901760, %v1199_v20  ;;  %v98_v30 = vsub.f32 %v1181_v14, %v97_v22  ;;  %68 = vmatpush.msra.mxu0 %v1171_v5  ;;  %v104_v31 = vsub.f32 %v1184_v15, %v103_v23  ;;  %156 = vmatpush.msra.mxu2 %v1184_v15  ;;  %v133_v44 = vand.u32 4294901760, %v1208_v25 }
  0x13   :  { %v110_v32 = vsub.f32 %v1188_v16, %v109_v24  ;;  %v116_v33 = vsub.f32 %v1193_v18, %v115_v26  ;;  %192 = vmatpush.msra.mxu3 %v1171_v5  ;;  %v1232_v34 = vsub.f32 %v52_v21, %v1214_v29  ;;  %v122_v42 = vsub.f32 %v1196_v19, %v121_v27 }
  0x14   :  { %v99_v38 = vand.u32 4294901760, %v98_v30  ;;  %v105_v39 = vand.u32 4294901760, %v104_v31  ;;  %70 = vmatpush.msra.mxu0 %v1173_v9  ;;  %159 = vmatpush.msra.mxu2 %v1188_v16  ;;  %v128_v43 = vsub.f32 %v1199_v20, %v127_v28  ;;  %v1246_v48 = vand.u32 4294901760, %v312_v35 }
  0x15   :  { %194 = vmatpush.msra.mxu3 %v1173_v9  ;;  %v79_v45 = vand.u32 4294901760, %v1232_v34  ;;  %v111_v47 = vand.u32 4294901760, %v110_v32  ;;  %v1248_v49 = vand.u32 4294901760, %v311_v36  ;;  %v1250_v50 = vand.u32 4294901760, %v310_v37 }
  0x16   :  { %100 = vmatpush.msra.mxu1 %v99_v38  ;;  %72 = vmatpush.msra.mxu0 %v1175_v10  ;;  %v117_v51 = vand.u32 4294901760, %v116_v33  ;;  %v1255_v53 = vand.u32 4294901760, %v309_v40  ;;  %v1257_v54 = vand.u32 4294901760, %v308_v41  ;;  %v1261_v55 = vsub.f32 %v312_v35, %v1246_v48  ;;  %v302_v35 = vld [vmem:[#allocation4 + $0x80] sm:$0xff] }
  0x17   :  { %162 = vmatpush.msra.mxu2 %v1193_v18  ;;  %196 = vmatpush.msra.mxu3 %v1175_v10  ;;  %v80_v52 = vsub.f32 %v1232_v34, %v79_v45  ;;  %v1264_v56 = vsub.f32 %v311_v36, %v1248_v49  ;;  %v1267_v57 = vsub.f32 %v310_v37, %v1250_v50  ;;  %v1269_v58 = vand.u32 4294901760, %v307_v46 }
  0x18   :  { %106 = vmatpush.msra.mxu1 %v105_v39  ;;  %74 = vmatpush.msra.mxu0 %v1177_v11  ;;  %v123_v59 = vand.u32 4294901760, %v122_v42  ;;  %v134_v60 = vsub.f32 %v1208_v25, %v133_v44  ;;  %v1277_v61 = vsub.f32 %v309_v40, %v1255_v53  ;;  %v357_v62 = vand.u32 4294901760, %v1261_v55 }
  0x19   :  { %165 = vmatpush.msra.mxu2 %v1196_v19  ;;  %198 = vmatpush.msra.mxu3 %v1177_v11  ;;  %v363_v63 = vand.u32 4294901760, %v1264_v56  ;;  %v369_v0 = vand.u32 4294901760, %v1267_v57  ;;  %v1284_v1 = vsub.f32 %v308_v41, %v1257_v54  ;;  %v129_v2 = vand.u32 4294901760, %v128_v43  ;;  %v301_v41 = vld [vmem:[#allocation4 + $0x68] sm:$0xff] }
  0x1a   :  { %112 = vmatpush.msra.mxu1 %v111_v47  ;;  %76 = vmatpush.msra.mxu0 %v1190_v17  ;;  %v81_v6 = vand.u32 4294901760, %v80_v52  ;;  %v358_v7 = vsub.f32 %v1261_v55, %v357_v62  ;;  %v375_v12 = vand.u32 4294901760, %v1277_v61  ;;  %v1298_v13 = vsub.f32 %v307_v46, %v1269_v58  ;;  %v300_v47 = vld [vmem:[#allocation4 + $0x50] sm:$0xff] }
  0x1b   :  { %168 = vmatpush.msra.mxu2 %v1199_v20  ;;  %200 = vmatpush.msra.mxu3 %v1190_v17  ;;  %v364_v8 = vsub.f32 %v1264_v56, %v363_v63  ;;  %v135_v14 = vand.u32 4294901760, %v134_v60  ;;  %v381_v30 = vand.u32 4294901760, %v1284_v1  ;;  %v1395_v40 = vand.u32 4294901760, %v302_v35 }
  0x1c   :  { %220 = vmatpush.msrb.mxu0 %v97_v22  ;;  %118 = vmatpush.msra.mxu1 %v117_v51  ;;  %v359_v21 = vand.u32 4294901760, %v358_v7  ;;  %v370_v22 = vsub.f32 %v1267_v57, %v369_v0  ;;  %v376_v15 = vsub.f32 %v1277_v61, %v375_v12  ;;  %v1416_v60 = vand.u32 4294901760, %v300_v47 }
  0x1d   :  { %171 = vmatpush.msra.mxu2 %v1208_v25  ;;  %204 = vmatmul.f32.vlgmr.msra.gmra.mxu3 %v79_v45  ;;  %v365_v31 = vand.u32 4294901760, %v364_v8  ;;  %v382_v16 = vsub.f32 %v1284_v1, %v381_v30  ;;  %v1402_v45 = vand.u32 4294901760, %v301_v41  ;;  %v1406_v46 = vsub.f32 %v302_v35, %v1395_v40 }
  0x1e   :  { %224 = vmatpush.msrb.mxu0 %v103_v23  ;;  %124 = vmatpush.msra.mxu1 %v123_v59  ;;  %v387_v23 = vand.u32 4294901760, %v1298_v13  ;;  %v371_v32 = vand.u32 4294901760, %v370_v22 }
  0x1f   :  { %174 = vmatmul.f32.vlgmr.msra.gmra.mxu2 %v1232_v34  ;;  %82 = vmatmul.f32.vlgmr.msra.gmra.mxu0 %v81_v6  ;;  %v1414_v59 = vsub.f32 %v301_v41, %v1402_v45  ;;  %v299_v6 = vld [vmem:[#allocation4 + $0x38] sm:$0xff] }
  0x20   :  { %228 = vmatpush.msrb.mxu0 %v109_v24  ;;  %130 = vmatpush.msra.mxu1 %v129_v2  ;;  %v377_v24 = vand.u32 4294901760, %v376_v15  ;;  %v388_v18 = vsub.f32 %v1298_v13, %v387_v23  ;;  %v417_v2 = vand.u32 4294901760, %v1406_v46 }
  0x21   :  { %360 = vmatpush.msrb.mxu3 %v359_v21  ;;  %315 = vmatpush.msrb.mxu2 %v1246_v48  ;;  %v423_v8 = vand.u32 4294901760, %v1414_v59  ;;  %v1425_v21 = vand.u32 4294901760, %v299_v6 }
  0x22   :  { %232 = vmatpush.msrb.mxu0 %v115_v26  ;;  %136 = vmatpush.msra.mxu1 %v135_v14  ;;  %v383_v26 = vand.u32 4294901760, %v382_v16  ;;  %v1423_v14 = vsub.f32 %v300_v47, %v1416_v60  ;;  %v418_v22 = vsub.f32 %v1406_v46, %v417_v2 }
  0x23   :  { %138 = vmatmul.f32.vlgmr.msra.gmra.mxu1 %v1214_v29  ;;  %366 = vmatpush.msrb.mxu3 %v365_v31  ;;  %v298_v31 = vld [vmem:[#allocation4 + $0x20] sm:$0xff]  ;;  %v424_v15 = vsub.f32 %v1414_v59, %v423_v8  ;;  %v1438_v16 = vsub.f32 %v299_v6, %v1425_v21  ;;  %v687_v6 = vld [vmem:[#allocation4 + $0x148] sm:$0xff] }
  0x24   :  { %260 = vmatpush.msrb.mxu1 %v1167_v3  ;;  %236 = vmatpush.msrb.mxu0 %v121_v27  ;;  %v389_v3 = vand.u32 4294901760, %v388_v18  ;;  %v303_v27 = vld [vmem:[#allocation4 + $0x98] sm:$0xff]  ;;  %v419_v18 = vand.u32 4294901760, %v418_v22 }
  0x25   :  { %372 = vmatpush.msrb.mxu3 %v371_v32  ;;  %317 = vmatpush.msrb.mxu2 %v1248_v49  ;;  %v1381_v34 = vand.u32 4294901760, %v303_v27  ;;  %v429_v32 = vand.u32 4294901760, %v1423_v14 }
  0x26   :  { %262 = vmatpush.msrb.mxu1 %v1169_v4  ;;  %240 = vmatpush.msrb.mxu0 %v127_v28  ;;  %v306_v4 = vld [vmem:[#allocation4 + $0xe0] sm:$0xff] }
  0x27   :  { %378 = vmatpush.msrb.mxu3 %v377_v24  ;;  %319 = vmatpush.msrb.mxu2 %v1250_v50  ;;  %v1391_v39 = vsub.f32 %v303_v27, %v1381_v34  ;;  %v1440_v24 = vand.u32 4294901760, %v298_v31 }
  0x28   :  { %264 = vmatpush.msrb.mxu1 %v1171_v5  ;;  %244 = vmatpush.msrb.mxu0 %v133_v44  ;;  %v1356_v5 = vand.u32 4294901760, %v306_v4 }
  0x29   :  { %246 = vmatmul.f32.vlgmr.msrb.gmra.mxu0 %v1214_v29  ;;  %384 = vmatpush.msrb.mxu3 %v383_v26  ;;  %v411_v44 = vand.u32 4294901760, %v1391_v39  ;;  %v297_v26 = vld [vmem:[#allocation4 + $0x8] sm:$0xff] }
  0x2a   :  { %266 = vmatpush.msrb.mxu1 %v1173_v9  ;;  %458 = vmatpush.msra.mxu0 %v1261_v55  ;;  %v305_v9 = vld [vmem:[#allocation4 + $0xc8] sm:$0xff]  ;;  %v1451_v27 = vand.u32 4294901760, %v297_v26  ;;  %v49_v55 = vld [vmem:[#allocation4 + $0x180] ss:$0 sm:$0xff] }
  0x2b   :  { %321 = vmatpush.msrb.mxu2 %v1255_v53  ;;  %390 = vmatpush.msrb.mxu3 %v389_v3  ;;  %v412_v52 = vsub.f32 %v1391_v39, %v411_v44  ;;  %v425_v3 = vand.u32 4294901760, %v424_v15 }
  0x2c   :  { %268 = vmatpush.msrb.mxu1 %v1175_v10  ;;  %461 = vmatpush.msra.mxu0 %v1264_v56  ;;  %v1359_v10 = vsub.f32 %v306_v4, %v1356_v5  ;;  %v430_v4 = vsub.f32 %v1423_v14, %v429_v32 }
  0x2d   :  { %323 = vmatpush.msrb.mxu2 %v1257_v54  ;;  %v413_v7 = vand.u32 4294901760, %v412_v52 }
  0x2e   :  { %270 = vmatpush.msrb.mxu1 %v1177_v11  ;;  %464 = vmatpush.msra.mxu0 %v1267_v57  ;;  %v1361_v11 = vand.u32 4294901760, %v305_v9  ;;  %v393_v19 = vand.u32 4294901760, %v1359_v10 }
  0x2f   :  { %325 = vmatpush.msrb.mxu2 %v1269_v58 }
  0x30   :  { %272 = vmatpush.msrb.mxu1 %v1190_v17  ;;  %467 = vmatpush.msra.mxu0 %v1277_v61  ;;  %v304_v17 = vld [vmem:[#allocation4 + $0xb0] sm:$0xff]  ;;  %v1367_v20 = vsub.f32 %v305_v9, %v1361_v11  ;;  %v394_v28 = vsub.f32 %v1359_v10, %v393_v19  ;;  %v435_v9 = vand.u32 4294901760, %v1438_v16 }
  0x31   :  { %274 = vmatmul.f32.vlgmr.msrb.gmra.mxu1 %v1214_v29  ;;  %327 = vmatpush.msrb.mxu2 %v1356_v5  ;;  %v1369_v25 = vand.u32 4294901760, %v304_v17 }
  0x32   :  { %511 = vmatpush.msra.mxu1 %v1246_v48  ;;  %470 = vmatpush.msra.mxu0 %v1284_v1  ;;  %v399_v29 = vand.u32 4294901760, %v1367_v20  ;;  %v395_v36 = vand.u32 4294901760, %v394_v28  ;;  %v431_v28 = vand.u32 4294901760, %v430_v4  ;;  %v436_v35 = vsub.f32 %v1438_v16, %v435_v9 }
  0x33   :  { %329 = vmatpush.msrb.mxu2 %v1361_v11  ;;  %v1379_v33 = vsub.f32 %v304_v17, %v1369_v25  ;;  %v440_v17 = vsub.f32 %v298_v31, %v1440_v24 }
  0x34   :  { %513 = vmatpush.msra.mxu1 %v1248_v49  ;;  %473 = vmatpush.msra.mxu0 %v1298_v13  ;;  %v400_v37 = vsub.f32 %v1367_v20, %v399_v29  ;;  %v437_v41 = vand.u32 4294901760, %v436_v35 }
  0x35   :  { %331 = vmatpush.msrb.mxu2 %v1369_v25  ;;  %v405_v38 = vand.u32 4294901760, %v1379_v33  ;;  %396 = vmatpush.msrb.mxu3 %v395_v36  ;;  %v441_v36 = vand.u32 4294901760, %v440_v17 }
  0x36   :  { %515 = vmatpush.msra.mxu1 %v1250_v50  ;;  %476 = vmatpush.msra.mxu0 %v1359_v10  ;;  %v401_v42 = vand.u32 4294901760, %v400_v37  ;;  %v446_v37 = vsub.f32 %v297_v26, %v1451_v27 }
  0x37   :  { %333 = vmatpush.msrb.mxu2 %v1381_v34  ;;  %v406_v43 = vsub.f32 %v1379_v33, %v405_v38 }
  0x38   :  { %517 = vmatpush.msra.mxu1 %v1255_v53  ;;  %479 = vmatpush.msra.mxu0 %v1367_v20 }
  0x39   :  { %335 = vmatpush.msrb.mxu2 %v1395_v40  ;;  %402 = vmatpush.msrb.mxu3 %v401_v42  ;;  %v407_v51 = vand.u32 4294901760, %v406_v43  ;;  %v442_v42 = vsub.f32 %v440_v17, %v441_v36  ;;  %v447_v43 = vand.u32 4294901760, %v446_v37 }
  0x3a   :  { %519 = vmatpush.msra.mxu1 %v1257_v54  ;;  %482 = vmatpush.msra.mxu0 %v1379_v33 }
  0x3b   :  { %337 = vmatpush.msrb.mxu2 %v1402_v45  ;;  %408 = vmatpush.msrb.mxu3 %v407_v51  ;;  %v443_v47 = vand.u32 4294901760, %v442_v42  ;;  %v448_v51 = vsub.f32 %v446_v37, %v447_v43 }
  0x3c   :  { %521 = vmatpush.msra.mxu1 %v1269_v58  ;;  %485 = vmatpush.msra.mxu0 %v1391_v39 }
  0x3d   :  { %339 = vmatpush.msrb.mxu2 %v1416_v60  ;;  %414 = vmatpush.msrb.mxu3 %v413_v7  ;;  %v449_v52 = vand.u32 4294901760, %v448_v51 }
  0x3e   :  { %523 = vmatpush.msra.mxu1 %v1356_v5  ;;  %488 = vmatpush.msra.mxu0 %v1406_v46 }
  0x3f   :  { %341 = vmatpush.msrb.mxu2 %v1425_v21  ;;  %420 = vmatpush.msrb.mxu3 %v419_v18 }
  0x40   :  { %525 = vmatpush.msra.mxu1 %v1361_v11  ;;  %491 = vmatpush.msra.mxu0 %v1414_v59  ;;  %v688_v59 = vld [vmem:[#allocation4 + $0x160] sm:$0xff] }
  0x41   :  { %343 = vmatpush.msrb.mxu2 %v1440_v24  ;;  %426 = vmatpush.msrb.mxu3 %v425_v3 }
  0x42   :  { %527 = vmatpush.msra.mxu1 %v1369_v25  ;;  %494 = vmatpush.msra.mxu0 %v1423_v14  ;;  %v1515_v14 = vand.u32 4294901760, %v687_v6 }
  0x43   :  { %345 = vmatpush.msrb.mxu2 %v1451_v27  ;;  %432 = vmatpush.msrb.mxu3 %v431_v28 }
  0x44   :  { %529 = vmatpush.msra.mxu1 %v1381_v34  ;;  %497 = vmatpush.msra.mxu0 %v1438_v16  ;;  %v1525_v15 = vsub.f32 %v687_v6, %v1515_v14  ;;  %v685_v16 = vld [vmem:[#allocation4 + $0x118] sm:$0xff] }
  0x45   :  { %552 = vmatpush.msra.mxu2 %v357_v62  ;;  %438 = vmatpush.msrb.mxu3 %v437_v41  ;;  %v1541_v4 = vand.u32 4294901760, %v685_v16 }
  0x46   :  { %531 = vmatpush.msra.mxu1 %v1395_v40  ;;  %500 = vmatpush.msra.mxu0 %v440_v17  ;;  %v746_v26 = vand.u32 4294901760, %v1525_v15 }
  0x47   :  { %556 = vmatpush.msra.mxu2 %v363_v63  ;;  %444 = vmatpush.msrb.mxu3 %v443_v47 }
  0x48   :  { %533 = vmatpush.msra.mxu1 %v1402_v45  ;;  %503 = vmatpush.msra.mxu0 %v446_v37  ;;  %v683_v37 = vld [vmem:[#allocation4 + $0xe8] sm:$0xff] }
  0x49   :  { %560 = vmatpush.msra.mxu2 %v369_v0  ;;  %450 = vmatpush.msrb.mxu3 %v449_v52  ;;  %v1562_v47 = vand.u32 4294901760, %v683_v37  ;;  %v682_v52 = vld [vmem:[#allocation4 + $0xd0] sm:$0xff] }
  0x4a   :  { %535 = vmatpush.msra.mxu1 %v1416_v60 }
  0x4b   :  { %564 = vmatpush.msra.mxu2 %v375_v12  ;;  %619 = vmatpush.msra.mxu3 %v1246_v48 }
  0x4c   :  { %537 = vmatpush.msra.mxu1 %v1425_v21 }
  0x4d   :  { %568 = vmatpush.msra.mxu2 %v381_v30  ;;  %621 = vmatpush.msra.mxu3 %v1248_v49 }
  0x4e   :  { %539 = vmatpush.msra.mxu1 %v1440_v24 }
  0x4f   :  { %572 = vmatpush.msra.mxu2 %v387_v23  ;;  %623 = vmatpush.msra.mxu3 %v1250_v50 }
  0x50   :  { %541 = vmatpush.msra.mxu1 %v1451_v27 }
  0x51   :  { %576 = vmatpush.msra.mxu2 %v393_v19  ;;  %625 = vmatpush.msra.mxu3 %v1255_v53 }
  0x53   :  { %580 = vmatpush.msra.mxu2 %v399_v29  ;;  %627 = vmatpush.msra.mxu3 %v1257_v54 }
  0x55   :  { %584 = vmatpush.msra.mxu2 %v405_v38  ;;  %629 = vmatpush.msra.mxu3 %v1269_v58 }
  0x57   :  { %588 = vmatpush.msra.mxu2 %v411_v44  ;;  %631 = vmatpush.msra.mxu3 %v1356_v5 }
  0x59   :  { %592 = vmatpush.msra.mxu2 %v417_v2  ;;  %633 = vmatpush.msra.mxu3 %v1361_v11  ;;  %v1507_v2 = vand.u32 4294901760, %v688_v59 }
  0x5b   :  { %596 = vmatpush.msra.mxu2 %v423_v8  ;;  %635 = vmatpush.msra.mxu3 %v1369_v25  ;;  %v1513_v8 = vsub.f32 %v688_v59, %v1507_v2 }
  0x5d   :  { %600 = vmatpush.msra.mxu2 %v429_v32  ;;  %637 = vmatpush.msra.mxu3 %v1381_v34  ;;  %v740_v31 = vand.u32 4294901760, %v1513_v8 }
  0x5f   :  { %604 = vmatpush.msra.mxu2 %v435_v9  ;;  %639 = vmatpush.msra.mxu3 %v1395_v40  ;;  %v741_v18 = vsub.f32 %v1513_v8, %v740_v31  ;;  %v684_v9 = vld [vmem:[#allocation4 + $0x100] sm:$0xff] }
  0x60   :  { %v1548_v35 = vand.u32 4294901760, %v684_v9 }
  0x61   :  { %608 = vmatpush.msra.mxu2 %v441_v36  ;;  %641 = vmatpush.msra.mxu3 %v1402_v45  ;;  %v689_v45 = vld [vmem:[#allocation4 + $0x178] sm:$0xff]  ;;  %v742_v17 = vand.u32 4294901760, %v741_v18  ;;  %v1552_v36 = vsub.f32 %v685_v16, %v1541_v4 }
  0x62   :  { %v1502_v46 = vand.u32 4294901760, %v689_v45 }
  0x63   :  { %612 = vmatpush.msra.mxu2 %v447_v43  ;;  %643 = vmatpush.msra.mxu3 %v1416_v60  ;;  %v1560_v43 = vsub.f32 %v684_v9, %v1548_v35  ;;  %v758_v51 = vand.u32 4294901760, %v1552_v36 }
  0x64   :  { %v1505_v60 = vsub.f32 %v689_v45, %v1502_v46  ;;  %692 = vmatpush.msrb.mxu0 %v1502_v46 }
  0x65   :  { %645 = vmatpush.msra.mxu3 %v1425_v21  ;;  %v686_v21 = vld [vmem:[#allocation4 + $0x130] sm:$0xff] }
  0x66   :  { %v734_v7 = vand.u32 4294901760, %v1505_v60  ;;  %694 = vmatpush.msrb.mxu0 %v1507_v2  ;;  %v1527_v32 = vand.u32 4294901760, %v686_v21 }
  0x67   :  { %647 = vmatpush.msra.mxu3 %v1440_v24 }
  0x68   :  { %v735_v22 = vsub.f32 %v1505_v60, %v734_v7  ;;  %696 = vmatpush.msrb.mxu0 %v1515_v14  ;;  %v1537_v3 = vsub.f32 %v686_v21, %v1527_v32 }
  0x69   :  { %649 = vmatpush.msra.mxu3 %v1451_v27  ;;  %v747_v27 = vsub.f32 %v1525_v15, %v746_v26 }
  0x6a   :  { %v736_v24 = vand.u32 4294901760, %v735_v22  ;;  %698 = vmatpush.msrb.mxu0 %v1527_v32  ;;  %v752_v28 = vand.u32 4294901760, %v1537_v3  ;;  %v676_v22 = vld [vmem:[#allocation4 + $0x40] sm:$0xff] }
  0x6b   :  { %v748_v41 = vand.u32 4294901760, %v747_v27  ;;  %v1645_v9 = vand.u32 4294901760, %v676_v22  ;;  %v675_v27 = vld [vmem:[#allocation4 + $0x28] sm:$0xff] }
  0x6c   :  { %737 = vmatpush.msrb.mxu1 %v736_v24  ;;  %700 = vmatpush.msrb.mxu0 %v1541_v4  ;;  %v753_v42 = vsub.f32 %v1537_v3, %v752_v28 }
  0x6e   :  { %743 = vmatpush.msrb.mxu1 %v742_v17  ;;  %702 = vmatpush.msrb.mxu0 %v1548_v35 }
  0x70   :  { %749 = vmatpush.msrb.mxu1 %v748_v41  ;;  %704 = vmatpush.msrb.mxu0 %v1562_v47 }
  0x9c   :  { %v83_v56 = vpop.f32.mrf.mxu0 }
  0x9d   :  { %v84_v57 = vadd.f32 %v83_v56, %v49_v55  ;;  %v754_v55 = vand.u32 4294901760, %v753_v42  ;;  %v764_v56 = vand.u32 4294901760, %v1560_v43 }
  0x9f   :  { %755 = vmatpush.msrb.mxu1 %v754_v55  ;;  %v1659_v55 = vand.u32 4294901760, %v675_v27 }
  0xa0   :  { %v139_v48 = vpop.f32.mrf.mxu1  ;;  %v205_v50 = vpop.f32.mrf.mxu3 }
  0xa1   :  { %v140_v61 = vadd.f32 %v139_v48, %v84_v57  ;;  %v1569_v57 = vsub.f32 %v683_v37, %v1562_v47  ;;  %v1571_v48 = vand.u32 4294901760, %v682_v52 }
  0xa2   :  { %v175_v49 = vpop.f32.mrf.mxu2 }
  0xa3   :  { %v176_v62 = vadd.f32 %v175_v49, %v140_v61  ;;  %v759_v49 = vsub.f32 %v1552_v36, %v758_v51  ;;  %v681_v61 = vld [vmem:[#allocation4 + $0xb8] sm:$0xff]  ;;  %706 = vmatpush.msrb.mxu0 %v1571_v48 }
  0xa5   :  { %v206_v53 = vadd.f32 %v205_v50, %v176_v62  ;;  %v765_v50 = vsub.f32 %v1560_v43, %v764_v56  ;;  %v770_v62 = vand.u32 4294901760, %v1569_v57 }
  0xa6   :  { %v247_v54 = vpop.f32.mrf.mxu0 }
  0xa7   :  { %v248_v58 = vadd.f32 %v247_v54, %v206_v53  ;;  %v1584_v53 = vsub.f32 %v682_v52, %v1571_v48  ;;  %v1586_v54 = vand.u32 4294901760, %v681_v61  ;;  %v1655_v52 = vsub.f32 %v676_v22, %v1645_v9 }
  0xa9   :  { %708 = vmatpush.msrb.mxu0 %v1586_v54 }
  0xae   :  { %v275_v63 = vpop.f32.mrf.mxu1 }
  0xaf   :  { %v276_v0 = vadd.f32 %v275_v63, %v248_v58  ;;  %v760_v58 = vand.u32 4294901760, %v759_v49  ;;  %v680_v63 = vld [vmem:[#allocation4 + $0xa0] sm:$0xff]  ;;  %v674_v49 = vld [vmem:[#allocation4 + $0x10] sm:$0xff] }
  0xb1   :  { %v1072_v1 = vmul.f32 -1.442695, %v276_v0  ;;  %v766_v0 = vand.u32 4294901760, %v765_v50  ;;  %761 = vmatpush.msrb.mxu1 %v760_v58  ;;  %v812_v58 = vand.u32 4294901760, %v1655_v52 }
  0xb3   :  { %1078 = vpow2.f32 %v1072_v1  ;;  %v771_v1 = vsub.f32 %v1569_v57, %v770_v62  ;;  %767 = vmatpush.msrb.mxu1 %v766_v0  ;;  %v817_v0 = vsub.f32 %v675_v27, %v1659_v55 }
  0xb9   :  { %v1079_v12 = vpop.eup %1078 }
  0xba   :  { %v281_v13 = vadd.f32 1.0, %v1079_v12  ;;  %v776_v12 = vand.u32 4294901760, %v1584_v53 }
  0xbc   :  { %1080 = vrcp.f32 %v281_v13  ;;  %v293_v10 = vand.u32 2147483648, %v281_v13  ;;  %v291_v19 = vand.u32 2147483647, %v281_v13  ;;  %vm287_vm2 = vweird.f32 %v281_v13 }
  0xbe   :  { %v294_v25 = vor.u32 1.1754944e-38, %v293_v10  ;;  %vm292_vm4 = vcmp.eq.f32.partialorder %v291_v19, 8.507059e+37  ;;  %v777_v10 = vsub.f32 %v1584_v53, %v776_v12 }
  0xc2   :  { %v1081_v30 = vpop.eup %1080 }
  0xc3   :  { %v283_v23 = vmul.f32 %v1081_v30, %v281_v13  ;;  %vm288_vm1 = vweird.f32 %v1081_v30  ;;  %v1596_v13 = vsub.f32 %v681_v61, %v1586_v54 }
  0xc4   :  { %vm289_vm3 = vmor %vm287_vm2, %vm288_vm1 }
  0xc5   :  { %v284_v5 = vsub.f32 1.0, %v283_v23  ;;  %v679_v23 = vld [vmem:[#allocation4 + $0x88] sm:$0xff] }
  0xc6   :  { %v1606_v19 = vand.u32 4294901760, %v679_v23 }
  0xc7   :  { %v285_v11 = vmul.f32 %v1081_v30, %v284_v5  ;;  %v772_v5 = vand.u32 4294901760, %v771_v1 }
  0xc9   :  { %v286_v20 = vadd.f32 %v1081_v30, %v285_v11  ;;  %v782_v11 = vand.u32 4294901760, %v1596_v13  ;;  %773 = vmatpush.msrb.mxu1 %v772_v5 }
  0xcb   :  { %v290_v29 = vsel %vm289_vm3, %v1081_v30, %v286_v20  ;;  %v1599_v30 = vand.u32 4294901760, %v680_v63 }
  0xcc   :  { %v295_v33 = vsel %vm292_vm4, %v294_v25, %v290_v29  ;;  %v678_v25 = vld [vmem:[#allocation4 + $0x70] sm:$0xff]  ;;  %v778_v29 = vand.u32 4294901760, %v777_v10  ;;  %v818_v10 = vand.u32 4294901760, %v817_v0 }
  0xcd   :  { %v346_v34 = vand.u32 4294901760, %v295_v33  ;;  %v1611_v20 = vsub.f32 %v680_v63, %v1599_v30  ;;  %710 = vmatpush.msrb.mxu0 %v1599_v30  ;;  %v1666_v63 = vand.u32 4294901760, %v674_v49 }
  0xce   :  { %779 = vmatpush.msrb.mxu1 %v778_v29 }
  0xcf   :  { %452 = vmatmul.f32.vlgmr.msrb.gmra.mxu3 %v346_v34  ;;  %v347_v38 = vsub.f32 %v295_v33, %v346_v34  ;;  %v783_v33 = vsub.f32 %v1596_v13, %v782_v11  ;;  %712 = vmatpush.msrb.mxu0 %v1606_v19  ;;  %v823_v5 = vsub.f32 %v674_v49, %v1666_v63 }
  0xd0   :  { %888 = vmatpush.msrb.mxu3 %v1502_v46 }
  0xd1   :  { %506 = vmatmul.f32.vlgmr.msra.gmra.mxu0 %v347_v38  ;;  %v348_v39 = vand.u32 4294901760, %v347_v38  ;;  %v824_v29 = vand.u32 4294901760, %v823_v5 }
  0xd2   :  { %890 = vmatpush.msrb.mxu3 %v1507_v2 }
  0xd3   :  { %545 = vmatmul.f32.vlgmr.msra.gmra.mxu1 %v348_v39  ;;  %v349_v40 = vsub.f32 %v347_v38, %v348_v39  ;;  %v1620_v38 = vand.u32 4294901760, %v678_v25  ;;  %v788_v39 = vand.u32 4294901760, %v1611_v20 }
  0xd4   :  { %892 = vmatpush.msrb.mxu3 %v1515_v14 }
  0xd5   :  { %v350_v44 = vand.u32 4294901760, %v349_v40  ;;  %v677_v40 = vld [vmem:[#allocation4 + $0x58] sm:$0xff]  ;;  %v1628_v59 = vsub.f32 %v678_v25, %v1620_v38  ;;  %v789_v21 = vsub.f32 %v1611_v20, %v788_v39  ;;  %714 = vmatpush.msrb.mxu0 %v1620_v38 }
  0xd6   :  { %894 = vmatpush.msrb.mxu3 %v1527_v32  ;;  %v1630_v6 = vand.u32 4294901760, %v677_v40 }
  0xd7   :  { %351 = vmatmul.f32.vlgmr.msrb.gmra.mxu2 %v350_v44  ;;  %651 = vmatmul.f32.vlgmr.msra.gmra.mxu3 %v346_v34  ;;  %v784_v44 = vand.u32 4294901760, %v783_v33  ;;  %v800_v24 = vand.u32 4294901760, %v1628_v59  ;;  %v790_v17 = vand.u32 4294901760, %v789_v21  ;;  %v819_v33 = vsub.f32 %v817_v0, %v818_v10 }
  0xd8   :  { %835 = vmatpush.msrb.mxu2 %v1505_v60  ;;  %896 = vmatpush.msrb.mxu3 %v1541_v4  ;;  %v1643_v18 = vsub.f32 %v677_v40, %v1630_v6  ;;  %v825_v40 = vsub.f32 %v823_v5, %v824_v29 }
  0xd9   :  { %785 = vmatpush.msrb.mxu1 %v784_v44  ;;  %716 = vmatpush.msrb.mxu0 %v1630_v6  ;;  %v801_v41 = vsub.f32 %v1628_v59, %v800_v24  ;;  %v820_v44 = vand.u32 4294901760, %v819_v33 }
  0xda   :  { %838 = vmatpush.msrb.mxu2 %v1513_v8  ;;  %898 = vmatpush.msrb.mxu3 %v1548_v35  ;;  %v806_v42 = vand.u32 4294901760, %v1643_v18  ;;  %v826_v21 = vand.u32 4294901760, %v825_v40 }
  0xdb   :  { %791 = vmatpush.msrb.mxu1 %v790_v17  ;;  %718 = vmatpush.msrb.mxu0 %v1645_v9  ;;  %v802_v61 = vand.u32 4294901760, %v801_v41 }
  0xdc   :  { %841 = vmatpush.msrb.mxu2 %v1525_v15  ;;  %900 = vmatpush.msrb.mxu3 %v1562_v47  ;;  %v807_v50 = vsub.f32 %v1643_v18, %v806_v42 }
  0xdd   :  { %720 = vmatpush.msrb.mxu0 %v1659_v55 }
  0xde   :  { %844 = vmatpush.msrb.mxu2 %v1537_v3  ;;  %902 = vmatpush.msrb.mxu3 %v1571_v48  ;;  %v808_v1 = vand.u32 4294901760, %v807_v50 }
  0xdf   :  { %614 = vmatmul.f32.vlgmr.msra.gmra.mxu2 %v346_v34  ;;  %v1618_v34 = vsub.f32 %v679_v23, %v1606_v19  ;;  %v813_v23 = vsub.f32 %v1655_v52, %v812_v58  ;;  %722 = vmatpush.msrb.mxu0 %v1666_v63 }
  0xe0   :  { %847 = vmatpush.msrb.mxu2 %v1552_v36  ;;  %904 = vmatpush.msrb.mxu3 %v1586_v54 }
  0xe1   :  { %v794_v45 = vand.u32 4294901760, %v1618_v34  ;;  %v814_v25 = vand.u32 4294901760, %v813_v23  ;;  %929 = vmatpush.msra.mxu0 %v734_v7 }
  0xe2   :  { %850 = vmatpush.msrb.mxu2 %v1560_v43  ;;  %906 = vmatpush.msrb.mxu3 %v1599_v30 }
  0xe3   :  { %v795_v16 = vsub.f32 %v1618_v34, %v794_v45  ;;  %933 = vmatpush.msra.mxu0 %v740_v31 }
  0xe4   :  { %853 = vmatpush.msrb.mxu2 %v1569_v57  ;;  %908 = vmatpush.msrb.mxu3 %v1606_v19 }
  0xe5   :  { %v796_v37 = vand.u32 4294901760, %v795_v16  ;;  %937 = vmatpush.msra.mxu0 %v746_v26 }
  0xe6   :  { %856 = vmatpush.msrb.mxu2 %v1584_v53  ;;  %910 = vmatpush.msrb.mxu3 %v1620_v38 }
  0xe7   :  { %797 = vmatpush.msrb.mxu1 %v796_v37  ;;  %941 = vmatpush.msra.mxu0 %v752_v28 }
  0xe8   :  { %859 = vmatpush.msrb.mxu2 %v1596_v13  ;;  %912 = vmatpush.msrb.mxu3 %v1630_v6 }
  0xe9   :  { %803 = vmatpush.msrb.mxu1 %v802_v61  ;;  %945 = vmatpush.msra.mxu0 %v758_v51 }
  0xea   :  { %862 = vmatpush.msrb.mxu2 %v1611_v20  ;;  %914 = vmatpush.msrb.mxu3 %v1645_v9 }
  0xeb   :  { %809 = vmatpush.msrb.mxu1 %v808_v1  ;;  %949 = vmatpush.msra.mxu0 %v764_v56 }
  0xec   :  { %865 = vmatpush.msrb.mxu2 %v1618_v34  ;;  %916 = vmatpush.msrb.mxu3 %v1659_v55 }
  0xed   :  { %815 = vmatpush.msrb.mxu1 %v814_v25  ;;  %953 = vmatpush.msra.mxu0 %v770_v62 }
  0xee   :  { %868 = vmatpush.msrb.mxu2 %v1628_v59  ;;  %918 = vmatpush.msrb.mxu3 %v1666_v63 }
  0xef   :  { %821 = vmatpush.msrb.mxu1 %v820_v44  ;;  %957 = vmatpush.msra.mxu0 %v776_v12 }
  0xf0   :  { %871 = vmatpush.msrb.mxu2 %v1643_v18 }
  0xf1   :  { %827 = vmatpush.msrb.mxu1 %v826_v21  ;;  %961 = vmatpush.msra.mxu0 %v782_v11 }
  0xf2   :  { %874 = vmatpush.msrb.mxu2 %v1655_v52 }
  0xf3   :  { %996 = vmatpush.msra.mxu1 %v1502_v46  ;;  %v313_v46 = vld [vmem:[#allocation4 + $0x188] ss:$0 sm:$0xff]  ;;  %965 = vmatpush.msra.mxu0 %v788_v39 }
  0xf4   :  { %877 = vmatpush.msrb.mxu2 %v817_v0 }
  0xf5   :  { %998 = vmatpush.msra.mxu1 %v1507_v2  ;;  %969 = vmatpush.msra.mxu0 %v794_v45 }
  0xf6   :  { %880 = vmatpush.msrb.mxu2 %v823_v5 }
  0xf7   :  { %1000 = vmatpush.msra.mxu1 %v1515_v14  ;;  %973 = vmatpush.msra.mxu0 %v800_v24 }
  0xf9   :  { %1002 = vmatpush.msra.mxu1 %v1527_v32  ;;  %977 = vmatpush.msra.mxu0 %v806_v42 }
  0xfb   :  { %1004 = vmatpush.msra.mxu1 %v1541_v4  ;;  %981 = vmatpush.msra.mxu0 %v812_v58 }
  0xfd   :  { %1006 = vmatpush.msra.mxu1 %v1548_v35  ;;  %985 = vmatpush.msra.mxu0 %v818_v10 }
  0xff   :  { %1008 = vmatpush.msra.mxu1 %v1562_v47  ;;  %989 = vmatpush.msra.mxu0 %v824_v29 }
 0x101   :  { %1010 = vmatpush.msra.mxu1 %v1571_v48 }
 0x103   :  { %1012 = vmatpush.msra.mxu1 %v1586_v54 }
 0x105   :  { %1014 = vmatpush.msra.mxu1 %v1599_v30 }
 0x107   :  { %1016 = vmatpush.msra.mxu1 %v1606_v19 }
 0x109   :  { %1018 = vmatpush.msra.mxu1 %v1620_v38  ;;  %v690_v38 = vld [vmem:[#allocation4 + $0x190] ss:$0 sm:$0xff] }
 0x10b   :  { %1020 = vmatpush.msra.mxu1 %v1630_v6 }
 0x10d   :  { %1022 = vmatpush.msra.mxu1 %v1645_v9 }
 0x10f   :  { %1024 = vmatpush.msra.mxu1 %v1659_v55 }
 0x111   :  { %1026 = vmatpush.msra.mxu1 %v1666_v63 }
 0x14e   :  { %v507_v14 = vpop.f32.mrf.mxu0 }
 0x150   :  { %v546_v15 = vpop.f32.mrf.mxu1 }
 0x152   :  { %v453_v60 = vpop.f32.mrf.mxu3 }
 0x15a   :  { %v352_v2 = vpop.f32.mrf.mxu2  ;;  %v652_v4 = vpop.f32.mrf.mxu3 }
 0x15b   :  { %v353_v7 = vadd.f32 %v352_v2, %v313_v46 }
 0x15d   :  { %v454_v8 = vadd.f32 %v453_v60, %v353_v7 }
 0x15f   :  { %v508_v31 = vadd.f32 %v507_v14, %v454_v8 }
 0x161   :  { %v547_v32 = vadd.f32 %v546_v15, %v508_v31 }
 0x162   :  { %v615_v26 = vpop.f32.mrf.mxu2 }
 0x163   :  { %v616_v3 = vadd.f32 %v615_v26, %v547_v32 }
 0x165   :  { %v653_v28 = vadd.f32 %v652_v4, %v616_v3 }
 0x167   :  { %v1073_v35 = vmul.f32 -1.442695, %v653_v28 }
 0x169   :  { %1082 = vpow2.f32 %v1073_v35 }
 0x16f   :  { %v1083_v36 = vpop.eup %1082 }
 0x170   :  { %v658_v43 = vadd.f32 1.0, %v1083_v36 }
 0x172   :  { %1084 = vrcp.f32 %v658_v43  ;;  %v670_v57 = vand.u32 2147483648, %v658_v43  ;;  %v668_v62 = vand.u32 2147483647, %v658_v43  ;;  %vm664_vm6 = vweird.f32 %v658_v43 }
 0x174   :  { %v671_v54 = vor.u32 1.1754944e-38, %v670_v57  ;;  %vm669_vm8 = vcmp.eq.f32.partialorder %v668_v62, 8.507059e+37 }
 0x178   :  { %v1085_v47 = vpop.eup %1084 }
 0x179   :  { %v660_v51 = vmul.f32 %v1085_v47, %v658_v43  ;;  %vm665_vm5 = vweird.f32 %v1085_v47 }
 0x17a   :  { %vm666_vm7 = vmor %vm664_vm6, %vm665_vm5 }
 0x17b   :  { %v661_v56 = vsub.f32 1.0, %v660_v51 }
 0x17d   :  { %v662_v48 = vmul.f32 %v1085_v47, %v661_v56 }
 0x17f   :  { %v663_v53 = vadd.f32 %v1085_v47, %v662_v48 }
 0x181   :  { %v667_v12 = vsel %vm666_vm7, %v1085_v47, %v663_v53 }
 0x182   :  { %v672_v13 = vsel %vm669_vm8, %v671_v54, %v667_v12 }
 0x183   :  { %v723_v30 = vand.u32 4294901760, %v672_v13 }
 0x185   :  { %829 = vmatmul.f32.vlgmr.msrb.gmra.mxu1 %v723_v30  ;;  %v724_v11 = vsub.f32 %v672_v13, %v723_v30 }
 0x187   :  { %883 = vmatmul.f32.vlgmr.msrb.gmra.mxu2 %v724_v11  ;;  %v725_v19 = vand.u32 4294901760, %v724_v11 }
 0x189   :  { %922 = vmatmul.f32.vlgmr.msrb.gmra.mxu3 %v725_v19  ;;  %v726_v20 = vsub.f32 %v724_v11, %v725_v19 }
 0x18b   :  { %v727_v34 = vand.u32 4294901760, %v726_v20 }
 0x18d   :  { %728 = vmatmul.f32.vlgmr.msrb.gmra.mxu0 %v727_v34  ;;  %1028 = vmatmul.f32.vlgmr.msra.gmra.mxu1 %v723_v30 }
 0x195   :  { %991 = vmatmul.f32.vlgmr.msra.gmra.mxu0 %v723_v30 }
 0x202   :  { %v830_v39 = vpop.f32.mrf.mxu1 }
 0x20a   :  { %v729_v45 = vpop.f32.mrf.mxu0  ;;  %v884_v22 = vpop.f32.mrf.mxu2 }
 0x20b   :  { %v730_v59 = vadd.f32 %v729_v45, %v690_v38  ;;  %v1029_v27 = vpop.f32.mrf.mxu1 }
 0x20c   :  { %v923_v24 = vpop.f32.mrf.mxu3 }
 0x20d   :  { %v831_v6 = vadd.f32 %v830_v39, %v730_v59 }
 0x20f   :  { %v885_v16 = vadd.f32 %v884_v22, %v831_v6 }
 0x211   :  { %v924_v18 = vadd.f32 %v923_v24, %v885_v16 }
 0x212   :  { %v992_v9 = vpop.f32.mrf.mxu0 }
 0x213   :  { %v993_v17 = vadd.f32 %v992_v9, %v924_v18 }
 0x215   :  { %v1030_v37 = vadd.f32 %v1029_v27, %v993_v17 }
 0x217   :  { %v1033_v41 = vsel %vm1032_vm9, %v1030_v37, -inf }
 0x218   :  { %v1034_v42 = vrot.slane %v1033_v41, 4 }
 0x21a   :  { %v1035_v52 = vmax.f32 %v1033_v41, %v1034_v42 }
 0x21c   :  { %v1036_v55 = vrot.slane %v1035_v52, 2 }
 0x21e   :  { %v1037_v49 = vmax.f32 %v1035_v52, %v1036_v55 }
 0x220   :  { %v1038_v61 = vrot.slane %v1037_v49, 1 }
 0x222   :  { %v1039_v50 = vmax.f32 %v1037_v49, %v1038_v61 }
 0x224   :  { %v1040_v58 = vsub.f32 %v1030_v37, %v1039_v50 }
 0x226   :  { %v1041_v63 = vmul.f32 1.442695, %v1040_v58 }
 0x228   :  { %1086 = vpow2.f32 %v1041_v63 }
 0x22e   :  { %v1087_v0 = vpop.eup %1086 }
 0x22f   :  { %v1043_v1 = vsel %vm1032_vm9, %v1087_v0, 0.0 }
 0x230   :  { %v1044_v23 = vrot.slane %v1043_v1, 4 }
 0x232   :  { %v1045_v5 = vadd.f32 %v1044_v23, %v1043_v1 }
 0x234   :  { %v1046_v10 = vrot.slane %v1045_v5, 2 }
 0x236   :  { %v1047_v25 = vadd.f32 %v1046_v10, %v1045_v5 }
 0x238   :  { %v1048_v29 = vrot.slane %v1047_v25, 1 }
 0x23a   :  { %v1049_v33 = vadd.f32 %v1048_v29, %v1047_v25 }
 0x23c   :  { %1088 = vrcp.f32 %v1049_v33  ;;  %v1061_v46 = vand.u32 2147483648, %v1049_v33  ;;  %v1059_v2 = vand.u32 2147483647, %v1049_v33  ;;  %vm1055_vm11 = vweird.f32 %v1049_v33 }
 0x23e   :  { %v1062_v8 = vor.u32 1.1754944e-38, %v1061_v46  ;;  %vm1060_vm13 = vcmp.eq.f32.partialorder %v1059_v2, 8.507059e+37 }
 0x242   :  { %v1089_v40 = vpop.eup %1088 }
 0x243   :  { %v1051_v44 = vmul.f32 %v1089_v40, %v1049_v33  ;;  %vm1056_vm10 = vweird.f32 %v1089_v40 }
 0x244   :  { %vm1057_vm12 = vmor %vm1055_vm11, %vm1056_vm10 }
 0x245   :  { %v1052_v21 = vsub.f32 1.0, %v1051_v44 }
 0x247   :  { %v1053_v60 = vmul.f32 %v1089_v40, %v1052_v21 }
 0x249   :  { %v1054_v7 = vadd.f32 %v1089_v40, %v1053_v60 }
 0x24b   :  { %v1058_v14 = vsel %vm1057_vm12, %v1089_v40, %v1054_v7 }
 0x24c   :  { %v1063_v31 = vsel %vm1060_vm13, %v1062_v8, %v1058_v14 }
 0x24d   :  { %v1064_v15 = vmul.f32 %v1087_v0, %v1063_v31 }
 0x24f   :  { %1065 = vst.msk [vmem:[%s1728_s2] sm:$0xff] %vm1032_vm9, %v1064_v15 }
 0x250   :  { %1070 = vsyncpa [#allocation3], 1 }
 0x251   :  { %1071 = vsyncpa [#allocation5], 1 }

</bundles_post_ra>
